<compile_context>
chip_gen: v7x
topology: tpu7x:2x2x1
jax: 0.10.0
libtpu: 0.0.40
codegen_flags: <defaults>
</compile_context>

<pallas_src>
import functools
import math

import jax
import jax.numpy as jnp
from jax import lax
from jax.experimental import pallas as pl
from jax.experimental.pallas import tpu as pltpu


def _round_up(n, m):
    return ((n + m - 1) // m) * m


def _proxy_anchor_kernel(x_ref, pt_ref, t_ref, pos_ref, neg_ref, cnt_ref, *,
                         nb_classes, mrg, alpha, matmul_dtype):
    """One class tile.

    x_ref  : (B, D_pad)      f32   embeddings (resident across the grid)
    pt_ref : (D_pad, tile_C) f32   proxies, transposed+padded
    t_ref  : (B, 1)          int32 labels
    pos_ref/neg_ref/cnt_ref : (1, tile_C) f32 per-class partial results
    """
    x = x_ref[...]                                  # (B, D_pad) f32
    pt = pt_ref[...]                                # (D_pad, TC) f32
    t = t_ref[...]                                  # (B, 1) int32

    # Post-matmul normalization: rsqrt of the squared norms (EUP), applied as
    # two broadcast multiplies on the (B, TC) tile instead of B*D + C*D divides.
    x_rs = lax.rsqrt(jnp.sum(x * x, axis=1, keepdims=True) + 1e-12)   # (B, 1)
    p_rs = lax.rsqrt(jnp.sum(pt * pt, axis=0, keepdims=True) + 1e-12)  # (1, TC)

    # Raw matmul on the MXU in bf16 with f32 accumulation.  pt is already
    # (D, C)-layout, so the rhs contracting dim sits on sublanes (no vxpose).
    s = lax.dot_general(
        x.astype(matmul_dtype), pt.astype(matmul_dtype),
        dimension_numbers=(((1,), (0,)), ((), ())),
        preferred_element_type=jnp.float32)                            # (B, TC)
    cos = s * x_rs * p_rs                                              # (B, TC)

    B, TC = cos.shape
    c_global = pl.program_id(0) * TC + lax.broadcasted_iota(jnp.int32, (B, TC), 1)
    one_hot = t == c_global                      # (B, TC) bool
    valid = c_global < nb_classes                # mask out zero-padded classes

    # Fused single exponential: each element needs exactly one of the two exps.
    # No clamp needed: |cos| <= 1 (up to bf16 rounding), so cos+-mrg is tiny.
    z = jnp.where(one_hot, -alpha * (cos - mrg), alpha * (cos + mrg))
    e = jnp.exp(z)

    pos_col = jnp.sum(jnp.where(one_hot, e, 0.0), axis=0, keepdims=True)   # (1, TC)
    neg_col = jnp.sum(
        jnp.where(jnp.logical_and(valid, jnp.logical_not(one_hot)), e, 0.0),
        axis=0, keepdims=True)                                             # (1, TC)
    has_pos = jnp.sum(one_hot.astype(jnp.float32), axis=0, keepdims=True)  # (1, TC)

    # Lane-dense (1, TC) vector stores.  Padded classes produce exactly 0.
    pos_ref[...] = jnp.log(1.0 + pos_col)
    neg_ref[...] = jnp.log(1.0 + neg_col)
    cnt_ref[...] = (has_pos > 0.0).astype(jnp.float32)


def proxy_anchor_loss(x, proxies, t, *, nb_classes, mrg=0.1, alpha=10.0,
                      matmul_dtype=jnp.bfloat16, max_class_tile=2048):
    """x: (B, D) f32 embeddings, proxies: (C, D) f32, t: (B,) int labels."""
    B, D = x.shape
    C, _ = proxies.shape

    d_pad = _round_up(max(D, 1), 128)
    c_pad = _round_up(max(C, 1), 128)
    # Class tile: multiple of 128 that divides c_pad, capped at max_class_tile.
    tile_c = 128 * math.gcd(c_pad // 128, max(max_class_tile // 128, 1))
    num_tiles = c_pad // tile_c

    # Zero-pad D (and C); zeros change neither norms nor dot products.
    # Proxies go in as (D_pad, C_pad) so the MXU contracting dim is on sublanes.
    x_pad = jnp.pad(x.astype(jnp.float32), ((0, 0), (0, d_pad - D)))
    pt_pad = jnp.pad(proxies.astype(jnp.float32).T,
                     ((0, d_pad - D), (0, c_pad - C)))
    t2d = t.reshape(B, 1).astype(jnp.int32)

    kernel = functools.partial(
        _proxy_anchor_kernel, nb_classes=nb_classes, mrg=float(mrg),
        alpha=float(alpha), matmul_dtype=matmul_dtype)

    pos_log, neg_log, has_pos = pl.pallas_call(
        kernel,
        out_shape=(
            jax.ShapeDtypeStruct((1, c_pad), jnp.float32),
            jax.ShapeDtypeStruct((1, c_pad), jnp.float32),
            jax.ShapeDtypeStruct((1, c_pad), jnp.float32),
        ),
        grid=(num_tiles,),
        in_specs=[
            pl.BlockSpec((B, d_pad), lambda c: (0, 0)),      # x resident
            pl.BlockSpec((d_pad, tile_c), lambda c: (0, c)),  # proxy tile
            pl.BlockSpec((B, 1), lambda c: (0, 0)),           # labels resident
        ],
        out_specs=(
            pl.BlockSpec((1, tile_c), lambda c: (0, c)),
            pl.BlockSpec((1, tile_c), lambda c: (0, c)),
            pl.BlockSpec((1, tile_c), lambda c: (0, c)),
        ),
        compiler_params=pltpu.CompilerParams(
            dimension_semantics=("parallel",)),   # class tiles are independent
    )(x_pad, pt_pad, t2d)

    # Tiny final reduction / normalization (a few hundred flops) in XLA.
    num_valid = jnp.sum(has_pos)
    pos_term = jnp.sum(pos_log) / (num_valid + 1e-8)
    neg_term = jnp.sum(neg_log) / nb_classes
    return pos_term + neg_term


# ------------------------- references for sanity checks -------------------------

def _reference_loss_exact(x, proxies, t, *, nb_classes, mrg=0.1, alpha=10.0):
    """Pure-JAX, f32, literal transcription of the PyTorch module."""
    def l2n(a):
        return a / jnp.sqrt(jnp.sum(a * a, axis=1, keepdims=True) + 1e-12)
    cos = l2n(x) @ l2n(proxies).T
    one_hot = (t[:, None] == jnp.arange(nb_classes)[None, :]).astype(jnp.float32)
    pos_exp = jnp.exp(-alpha * jnp.clip(cos - mrg, -10, 10))
    neg_exp = jnp.exp(alpha * jnp.clip(cos + mrg, -10, 10))
    p_sim = jnp.sum(jnp.where(one_hot == 1, pos_exp, 0.0), axis=0)
    n_sim = jnp.sum(jnp.where(one_hot == 0, neg_exp, 0.0), axis=0)
    num_valid = jnp.sum((jnp.sum(one_hot, axis=0) != 0).astype(jnp.float32))
    pos_term = jnp.sum(jnp.log(1.0 + p_sim)) / (num_valid + 1e-8)
    neg_term = jnp.sum(jnp.log(1.0 + n_sim)) / nb_classes
    return pos_term + neg_term


def _reference_loss_mirror(x, proxies, t, *, nb_classes, mrg=0.1, alpha=10.0,
                           matmul_dtype=jnp.bfloat16):
    """Mirrors the kernel numerics (bf16 matmul, post-matmul rsqrt norm)."""
    s = lax.dot_general(x.astype(matmul_dtype), proxies.astype(matmul_dtype),
                        dimension_numbers=(((1,), (1,)), ((), ())),
                        preferred_element_type=jnp.float32)
    x_rs = lax.rsqrt(jnp.sum(x * x, axis=1, keepdims=True) + 1e-12)
    p_rs = lax.rsqrt(jnp.sum(proxies * proxies, axis=1, keepdims=True) + 1e-12)
    cos = s * x_rs * p_rs.T
    one_hot = t[:, None] == jnp.arange(nb_classes)[None, :]
    z = jnp.where(one_hot, -alpha * (cos - mrg), alpha * (cos + mrg))
    e = jnp.exp(z)
    p_sim = jnp.sum(jnp.where(one_hot, e, 0.0), axis=0)
    n_sim = jnp.sum(jnp.where(one_hot, 0.0, e), axis=0)
    num_valid = jnp.sum((jnp.sum(one_hot.astype(jnp.float32), axis=0) > 0)
                        .astype(jnp.float32))
    pos_term = jnp.sum(jnp.log(1.0 + p_sim)) / (num_valid + 1e-8)
    neg_term = jnp.sum(jnp.log(1.0 + n_sim)) / nb_classes
    return pos_term + neg_term


if __name__ == "__main__":
    nb_classes = 16
    sz_embed = 32
    batch = 8
    mrg, alpha = 0.1, 10.0

    key = jax.random.PRNGKey(0)
    kx, kp, kt = jax.random.split(key, 3)

    x = jax.random.normal(kx, (batch, sz_embed), dtype=jnp.float32)
    # kaiming_normal_(mode='fan_out') on a (nb_classes, sz_embed) tensor.
    std = math.sqrt(2.0 / (1.0 + 0.01 ** 2)) / math.sqrt(nb_classes)
    proxies = std * jax.random.normal(kp, (nb_classes, sz_embed),
                                      dtype=jnp.float32)
    t = jax.random.randint(kt, (batch,), 0, nb_classes, dtype=jnp.int32)

    loss = proxy_anchor_loss(x, proxies, t, nb_classes=nb_classes,
                             mrg=mrg, alpha=alpha)
    loss = jax.block_until_ready(loss)

    # Tight check against a reference that mirrors the kernel numerics.
    ref_m = _reference_loss_mirror(x, proxies, t, nb_classes=nb_classes,
                                   mrg=mrg, alpha=alpha)
    assert jnp.allclose(loss, ref_m, rtol=1e-3, atol=1e-3), (loss, ref_m)

    # Looser check against the exact f32 PyTorch semantics (tolerance covers
    # the bf16 MXU rounding, which alpha=10 amplifies through exp()).
    ref_e = _reference_loss_exact(x, proxies, t, nb_classes=nb_classes,
                                  mrg=mrg, alpha=alpha)
    assert jnp.allclose(loss, ref_e, rtol=5e-2, atol=5e-2), (loss, ref_e)

    print("KERNEL_OK")
</pallas_src>

<mosaic_0001>
module attributes {stable_mosaic.version = 11 : i64} {
  func.func @_proxy_anchor_kernel(%arg0: i32, %arg1: memref<8x128xf32, #tpu.memory_space<vmem>>, %arg2: memref<128x128xf32, #tpu.memory_space<vmem>>, %arg3: memref<8x1xi32, #tpu.memory_space<vmem>>, %arg4: memref<1x128xf32, #tpu.memory_space<vmem>>, %arg5: memref<1x128xf32, #tpu.memory_space<vmem>>, %arg6: memref<1x128xf32, #tpu.memory_space<vmem>>) attributes {dimension_semantics = [#tpu.dimension_semantics<parallel>], iteration_bounds = array<i64: 1>, scalar_prefetch = 0 : i64, scratch_operands = 0 : i64, tpu.core_type = #tpu.core_type<tc>, window_params = [{pipeline_mode = #tpu.pipeline_mode<synchronous>, transform_indices = @transform_0, window_bounds = array<i64: 8, 128>}, {transform_indices = @transform_1, window_bounds = array<i64: 128, 128>}, {pipeline_mode = #tpu.pipeline_mode<synchronous>, transform_indices = @transform_2, window_bounds = array<i64: 8, 1>}, {transform_indices = @transform_3, window_bounds = array<i64: 1, 128>}, {transform_indices = @transform_4, window_bounds = array<i64: 1, 128>}, {transform_indices = @transform_5, window_bounds = array<i64: 1, 128>}]} {
    %c0 = arith.constant 0 : index
    %c0_0 = arith.constant 0 : index
    %0 = vector.load %arg1[%c0, %c0_0] : memref<8x128xf32, #tpu.memory_space<vmem>>, vector<8x128xf32>
    %c0_1 = arith.constant 0 : index
    %c0_2 = arith.constant 0 : index
    %1 = vector.load %arg2[%c0_1, %c0_2] : memref<128x128xf32, #tpu.memory_space<vmem>>, vector<128x128xf32>
    %c0_3 = arith.constant 0 : index
    %c0_4 = arith.constant 0 : index
    %2 = vector.load %arg3[%c0_3, %c0_4] : memref<8x1xi32, #tpu.memory_space<vmem>>, vector<8x1xi32>
    %3 = arith.mulf %0, %0 : vector<8x128xf32>
    %cst = arith.constant dense<0.000000e+00> : vector<8xf32>
    %4 = vector.multi_reduction <add>, %3, %cst [1] : vector<8x128xf32> to vector<8xf32>
    %5 = vector.shape_cast %4 : vector<8xf32> to vector<8x1xf32>
    %cst_5 = arith.constant 9.99999996E-13 : f32
    %6 = vector.broadcast %cst_5 : f32 to vector<8x1xf32>
    %7 = arith.addf %5, %6 : vector<8x1xf32>
    %8 = math.rsqrt %7 : vector<8x1xf32>
    %9 = arith.mulf %1, %1 : vector<128x128xf32>
    %cst_6 = arith.constant dense<0.000000e+00> : vector<128xf32>
    %10 = vector.multi_reduction <add>, %9, %cst_6 [0] : vector<128x128xf32> to vector<128xf32>
    %11 = vector.shape_cast %10 : vector<128xf32> to vector<1x128xf32>
    %cst_7 = arith.constant 9.99999996E-13 : f32
    %12 = vector.broadcast %cst_7 : f32 to vector<1x128xf32>
    %13 = arith.addf %11, %12 : vector<1x128xf32>
    %14 = math.rsqrt %13 : vector<1x128xf32>
    %15 = arith.truncf %0 : vector<8x128xf32> to vector<8x128xbf16>
    %16 = arith.truncf %1 : vector<128x128xf32> to vector<128x128xbf16>
    %cst_8 = arith.constant dense<0.000000e+00> : vector<8x128xf32>
    %17 = tpu.matmul %15, %16, %cst_8 {dimension_numbers = #tpu.dot_dimension_numbers<[1], [0], [0], [1], [0, 0, 1, 1], [], []>} : vector<8x128xbf16>, vector<128x128xbf16>, vector<8x128xf32> -> vector<8x128xf32>
    %18 = vector.broadcast %8 : vector<8x1xf32> to vector<8x128xf32>
    %19 = arith.mulf %17, %18 : vector<8x128xf32>
    %20 = vector.broadcast %14 : vector<1x128xf32> to vector<8x128xf32>
    %21 = arith.mulf %19, %20 : vector<8x128xf32>
    %c128_i32 = arith.constant 128 : i32
    %22 = arith.muli %arg0, %c128_i32 : i32
    %23 = tpu.iota {dimensions = array<i32: 1>} : vector<8x128xi32>
    %24 = vector.broadcast %22 : i32 to vector<8x128xi32>
    %25 = arith.addi %24, %23 : vector<8x128xi32>
    %26 = vector.broadcast %2 : vector<8x1xi32> to vector<8x128xi32>
    %27 = arith.cmpi eq, %26, %25 : vector<8x128xi32>
    %c16_i32 = arith.constant 16 : i32
    %28 = vector.broadcast %c16_i32 : i32 to vector<8x128xi32>
    %29 = arith.cmpi slt, %25, %28 : vector<8x128xi32>
    %cst_9 = arith.constant 1.000000e-01 : f32
    %30 = vector.broadcast %cst_9 : f32 to vector<8x128xf32>
    %31 = arith.subf %21, %30 : vector<8x128xf32>
    %cst_10 = arith.constant -1.000000e+01 : f32
    %32 = vector.broadcast %cst_10 : f32 to vector<8x128xf32>
    %33 = arith.mulf %32, %31 : vector<8x128xf32>
    %cst_11 = arith.constant 1.000000e-01 : f32
    %34 = vector.broadcast %cst_11 : f32 to vector<8x128xf32>
    %35 = arith.addf %21, %34 : vector<8x128xf32>
    %cst_12 = arith.constant 1.000000e+01 : f32
    %36 = vector.broadcast %cst_12 : f32 to vector<8x128xf32>
    %37 = arith.mulf %36, %35 : vector<8x128xf32>
    %38 = arith.select %27, %33, %37 : vector<8x128xi1>, vector<8x128xf32>
    %39 = math.exp %38 : vector<8x128xf32>
    %cst_13 = arith.constant 0.000000e+00 : f32
    %40 = vector.broadcast %cst_13 : f32 to vector<8x128xf32>
    %41 = arith.select %27, %39, %40 : vector<8x128xi1>, vector<8x128xf32>
    %cst_14 = arith.constant dense<0.000000e+00> : vector<128xf32>
    %42 = vector.multi_reduction <add>, %41, %cst_14 [0] : vector<8x128xf32> to vector<128xf32>
    %43 = vector.shape_cast %42 : vector<128xf32> to vector<1x128xf32>
    %cst_15 = arith.constant dense<true> : vector<8x128xi1>
    %44 = arith.xori %27, %cst_15 : vector<8x128xi1>
    %45 = arith.andi %29, %44 : vector<8x128xi1>
    %cst_16 = arith.constant 0.000000e+00 : f32
    %46 = vector.broadcast %cst_16 : f32 to vector<8x128xf32>
    %47 = arith.select %45, %39, %46 : vector<8x128xi1>, vector<8x128xf32>
    %cst_17 = arith.constant dense<0.000000e+00> : vector<128xf32>
    %48 = vector.multi_reduction <add>, %47, %cst_17 [0] : vector<8x128xf32> to vector<128xf32>
    %49 = vector.shape_cast %48 : vector<128xf32> to vector<1x128xf32>
    %50 = arith.extui %27 : vector<8x128xi1> to vector<8x128xi32>
    %51 = arith.sitofp %50 : vector<8x128xi32> to vector<8x128xf32>
    %cst_18 = arith.constant dense<0.000000e+00> : vector<128xf32>
    %52 = vector.multi_reduction <add>, %51, %cst_18 [0] : vector<8x128xf32> to vector<128xf32>
    %53 = vector.shape_cast %52 : vector<128xf32> to vector<1x128xf32>
    %cst_19 = arith.constant 1.000000e+00 : f32
    %54 = vector.broadcast %cst_19 : f32 to vector<1x128xf32>
    %55 = arith.addf %54, %43 : vector<1x128xf32>
    %56 = math.log %55 : vector<1x128xf32>
    %c0_20 = arith.constant 0 : index
    %c0_21 = arith.constant 0 : index
    %57 = vector.load %arg4[%c0_20, %c0_21] : memref<1x128xf32, #tpu.memory_space<vmem>>, vector<1x128xf32>
    tpu.vector_store %arg4[%c0_20, %c0_21], %56 {strides = array<i32>} : memref<1x128xf32, #tpu.memory_space<vmem>>, vector<1x128xf32>,
    %cst_22 = arith.constant 1.000000e+00 : f32
    %58 = vector.broadcast %cst_22 : f32 to vector<1x128xf32>
    %59 = arith.addf %58, %49 : vector<1x128xf32>
    %60 = math.log %59 : vector<1x128xf32>
    %c0_23 = arith.constant 0 : index
    %c0_24 = arith.constant 0 : index
    %61 = vector.load %arg5[%c0_23, %c0_24] : memref<1x128xf32, #tpu.memory_space<vmem>>, vector<1x128xf32>
    tpu.vector_store %arg5[%c0_23, %c0_24], %60 {strides = array<i32>} : memref<1x128xf32, #tpu.memory_space<vmem>>, vector<1x128xf32>,
    %cst_25 = arith.constant 0.000000e+00 : f32
    %62 = vector.broadcast %cst_25 : f32 to vector<1x128xf32>
    %63 = arith.cmpf ogt, %53, %62 : vector<1x128xf32>
    %64 = arith.extui %63 : vector<1x128xi1> to vector<1x128xi32>
    %65 = arith.sitofp %64 : vector<1x128xi32> to vector<1x128xf32>
    %c0_26 = arith.constant 0 : index
    %c0_27 = arith.constant 0 : index
    %66 = vector.load %arg6[%c0_26, %c0_27] : memref<1x128xf32, #tpu.memory_space<vmem>>, vector<1x128xf32>
    tpu.vector_store %arg6[%c0_26, %c0_27], %65 {strides = array<i32>} : memref<1x128xf32, #tpu.memory_space<vmem>>, vector<1x128xf32>,
    return
  }
  func.func @transform_0(%arg0: i32) -> (i32, i32) {
    %c0_i32 = arith.constant 0 : i32
    %c0_i32_0 = arith.constant 0 : i32
    %c0_i32_1 = arith.constant 0 : i32
    return %c0_i32, %c0_i32_0 : i32, i32
  }
  func.func @transform_1(%arg0: i32) -> (i32, i32) {
    %c0_i32 = arith.constant 0 : i32
    %c0_i32_0 = arith.constant 0 : i32
    return %c0_i32, %arg0 : i32, i32
  }
  func.func @transform_2(%arg0: i32) -> (i32, i32) {
    %c0_i32 = arith.constant 0 : i32
    %c0_i32_0 = arith.constant 0 : i32
    %c0_i32_1 = arith.constant 0 : i32
    return %c0_i32, %c0_i32_0 : i32, i32
  }
  func.func @transform_3(%arg0: i32) -> (i32, i32) {
    %c0_i32 = arith.constant 0 : i32
    %c0_i32_0 = arith.constant 0 : i32
    return %c0_i32, %arg0 : i32, i32
  }
  func.func @transform_4(%arg0: i32) -> (i32, i32) {
    %c0_i32 = arith.constant 0 : i32
    %c0_i32_0 = arith.constant 0 : i32
    return %c0_i32, %arg0 : i32, i32
  }
  func.func @transform_5(%arg0: i32) -> (i32, i32) {
    %c0_i32 = arith.constant 0 : i32
    %c0_i32_0 = arith.constant 0 : i32
    return %c0_i32, %arg0 : i32, i32
  }
}

</mosaic_0001>

<bundles_post_ra>
// kernel: tpu_custom_call.1
= control target key start
LH: loop header
LB: loop body
LE: loop exit
PB: predicated region body
PF: predicated region fallthrough
CT: control target
= control target key end

     0   :  { %11 = vsyncpa [#allocation3], 0  ;;  %s514_s0 = inlined_call_operand.vmem [shape: f32[8,128], index: 0, kind: input, shape index: {}]   ;;  %s515_s1 = inlined_call_operand.hbm [shape: f32[128,128], index: 1, kind: input, shape index: {}]   ;;  %s516_s2 = inlined_call_operand.vmem [shape: s32[8,1], index: 2, kind: input, shape index: {}]   ;;  %s517_s3 = inlined_call_operand.hbm [shape: f32[1,128], index: 3, kind: output, shape index: {0}]   ;;  %s518_s4 = inlined_call_operand.hbm [shape: f32[1,128], index: 4, kind: output, shape index: {1}]   ;;  %s519_s5 = inlined_call_operand.hbm [shape: f32[1,128], index: 5, kind: output, shape index: {2}]  }
   0x1   :  { %12 = vsyncpa [#allocation4], 0 }
   0x2   :  { %13 = vsyncpa [#allocation7], 0  ;;  %s389_s18 = smov [#allocation2]   ;;  %s295_s22 = scalar_lea.hbm %s515_s1, 2048 }
   0x3   :  { %s21_s19 = sshll.u32 %s389_s18, 4  ;;  %p296_p0 = scmp.ne.s32.totalorder %s515_s1, %s295_s22  ;;  %s22_s19 = int_to_ptr.vmem [resolvable:$true] %s21_s19 }
   0x4   :  { %p299_p1 = scmp.lt.u32.totalorder %s295_s22, %s515_s1 }
   0x6   :  { %p301_p2 = pnand %p299_p1, %p296_p0 }
   0x8   :  { %304 = shalt.err (!%p301_p2)
}
   0x9   :  { %s305_s27 = scalar_lea.vmem %s22_s19, 2048  ;;  %p310_p4 = scmp.lt.s32.totalorder %s22_s19, %s22_s19 }
   0xa   :  { %p306_p3 = scmp.ne.s32.totalorder %s22_s19, %s305_s27  ;;  %p311_p5 = scmp.lt.s32.totalorder %s305_s27, %s305_s27 }
   0xc   :  { %p312_p6 = por %p311_p5, %p310_p4 }
   0xe   :  { %p313_p7 = pnand %p312_p6, %p306_p3 }
  0x10   :  { %316 = shalt.err (!%p313_p7)
}
  0x11   :  { %s390_s28 = smov 128   ;;  %s391_s29 = smov 8  }
  0x12   :  { %27 = dma.hbm_to_vmem [thread:$0]  %s515_s1, 2048, %s22_s19, [#allocation3], %s390_s28, %s390_s28, %s391_s29  }
  0x13   :  { %383 = dma.done.wait [#allocation3], 2048  }
  0x14   :  { %384 = vsyncadd [#allocation3], 4294965248  ;;  %v392_v0 = vmov 0.0   ;;  %vm393_vm0 = vmmov 0   ;;  %v394_v1 = vmov 0   ;;  %v35_v2 = vld [vmem:[#allocation2] sm:$0xff]  ;;  %v148_v61 = vlaneseq }
  0x15   :  { %254 = vmatprep.subr.bf16.mxu0 %v392_v0  ;;  %270 = vmatprep.mubr.msk.bf16.mxu0 %vm393_vm0, %v392_v0  ;;  %v36_v3 = vld [vmem:[#allocation2 + $0x8] sm:$0xff]  ;;  %v37_v4 = vld [vmem:[#allocation2 + $0x10] sm:$0xff]  ;;  %v57_v5 = vmul.f32 %v35_v2, %v35_v2  ;;  %v38_v8 = vld [vmem:[#allocation2 + $0x18] sm:$0xff]  ;;  %vm395_vm4 = vmmov 1   ;;  %s397_s10 = smov [#allocation5]   ;;  %s398_s12 = smov [#allocation8]  }
  0x16   :  { %284 = vset.pattern.permute.xlu0 %v394_v1  ;;  %v58_v6 = vmul.f32 %v36_v3, %v36_v3  ;;  %v97_v7 = vpack.c.bf16 %v36_v3, %v35_v2  ;;  %v59_v9 = vmul.f32 %v37_v4, %v37_v4  ;;  %v60_v11 = vmul.f32 %v38_v8, %v38_v8  ;;  %v39_v13 = vld [vmem:[#allocation2 + $0x20] sm:$0xff]  ;;  %v40_v14 = vld [vmem:[#allocation2 + $0x28] sm:$0xff]  ;;  %v41_v21 = vld [vmem:[#allocation2 + $0x30] sm:$0xff]  ;;  %s206_s11 = sshll.u32 %s397_s10, 4  ;;  %s226_s13 = sshll.u32 %s398_s12, 4  ;;  %s462_s11 = int_to_ptr.vmem [resolvable:$true] %s206_s11  ;;  %s464_s13 = int_to_ptr.vmem [resolvable:$true] %s226_s13 }
  0x17   :  { %v98_v12 = vpack.c.bf16 %v38_v8, %v37_v4  ;;  %v61_v16 = vmul.f32 %v39_v13, %v39_v13  ;;  %v62_v18 = vmul.f32 %v40_v14, %v40_v14  ;;  %v99_v19 = vpack.c.bf16 %v40_v14, %v39_v13  ;;  %v34_v20 = vld [vmem:[%s514_s0] sm:$0xff]  ;;  %v42_v22 = vld [vmem:[#allocation2 + $0x38] sm:$0xff]  ;;  %v44_v30 = vld [vmem:[#allocation2 + $0x48] sm:$0xff] }
  0x18   :  { %v73_v10 = vadd.f32 %v58_v6, %v57_v5  ;;  %255 = vmatpush3.bf16.msra.mxu0 %v97_v7  ;;  %v52_v23 = vmul.f32 %v34_v20, %v34_v20  ;;  %v63_v25 = vmul.f32 %v41_v21, %v41_v21  ;;  %v64_v27 = vmul.f32 %v42_v22, %v42_v22  ;;  %v43_v29 = vld [vmem:[#allocation2 + $0x40] sm:$0xff]  ;;  %v45_v36 = vld [vmem:[#allocation2 + $0x50] sm:$0xff]  ;;  %v46_v37 = vld [vmem:[#allocation2 + $0x58] sm:$0xff] }
  0x19   :  { %256 = vmatprep.subr.bf16.mxu0 %v392_v0  ;;  %v100_v28 = vpack.c.bf16 %v42_v22, %v41_v21  ;;  %v65_v32 = vmul.f32 %v43_v29, %v43_v29  ;;  %v66_v34 = vmul.f32 %v44_v30, %v44_v30  ;;  %v101_v35 = vpack.c.bf16 %v44_v30, %v43_v29  ;;  %v47_v43 = vld [vmem:[#allocation2 + $0x60] sm:$0xff]  ;;  %v48_v44 = vld [vmem:[#allocation2 + $0x68] sm:$0xff]  ;;  %v49_v50 = vld [vmem:[#allocation2 + $0x70] sm:$0xff] }
  0x1a   :  { %v74_v15 = vadd.f32 %v73_v10, %v59_v9  ;;  %53 = vadd.xlane.f32.xlu0 %v52_v23  ;;  %v67_v39 = vmul.f32 %v45_v36, %v45_v36  ;;  %v68_v41 = vmul.f32 %v46_v37, %v46_v37  ;;  %v102_v42 = vpack.c.bf16 %v46_v37, %v45_v36  ;;  %v50_v51 = vld [vmem:[#allocation2 + $0x78] sm:$0xff]  ;;  %v51_v58 = vld [vmem:[%s516_s2] sm:$0xff]  ;;  %s396_s2 = smov [#allocation6]  }
  0x1b   :  { %v69_v46 = vmul.f32 %v47_v43, %v47_v43  ;;  %v70_v48 = vmul.f32 %v48_v44, %v48_v44  ;;  %v103_v49 = vpack.c.bf16 %v48_v44, %v47_v43  ;;  %v71_v53 = vmul.f32 %v49_v50, %v49_v50  ;;  %s216_s9 = sshll.u32 %s396_s2, 4  ;;  %s217_s9 = int_to_ptr.vmem [resolvable:$true] %s216_s9 }
  0x1c   :  { %v75_v17 = vadd.f32 %v74_v15, %v60_v11  ;;  %257 = vmatpush3.bf16.msra.mxu0 %v98_v12  ;;  %v72_v55 = vmul.f32 %v50_v51, %v50_v51  ;;  %v104_v56 = vpack.c.bf16 %v50_v51, %v49_v50  ;;  %v96_v59 = vpack.c.bf16 %v34_v20, %v34_v20  ;;  %s317_s14 = scalar_lea.vmem %s217_s9, 16  ;;  %s321_s15 = scalar_lea.vmem %s217_s9, 32 }
  0x1d   :  { %258 = vmatprep.subr.bf16.mxu0 %v392_v0  ;;  %v149_v63 = vand.u32 127, %v148_v61  ;;  %p318_p8 = scmp.ne.s32.totalorder %s217_s9, %s317_s14  ;;  %p322_p9 = scmp.lt.s32.totalorder %s217_s9, %s217_s9 }
  0x1e   :  { %v76_v24 = vadd.f32 %v75_v17, %v61_v16  ;;  %p323_p10 = scmp.lt.s32.totalorder %s321_s15, %s317_s14 }
  0x1f   :  { %vm156_vm3 = vcmp.lt.s32.totalorder %v149_v63, 16 }
  0x20   :  { %v77_v26 = vadd.f32 %v76_v24, %v62_v18  ;;  %259 = vmatpush3.bf16.msra.mxu0 %v99_v19  ;;  %p324_p11 = por %p323_p10, %p322_p9 }
  0x21   :  { %260 = vmatprep.subr.bf16.mxu0 %v392_v0 }
  0x22   :  { %v78_v31 = vadd.f32 %v77_v26, %v63_v25  ;;  %p325_p12 = pnand %p324_p11, %p318_p8 }
  0x24   :  { %v79_v33 = vadd.f32 %v78_v31, %v64_v27  ;;  %261 = vmatpush3.bf16.msra.mxu0 %v100_v28 }
  0x25   :  { %262 = vmatprep.subr.bf16.mxu0 %v392_v0 }
  0x26   :  { %v80_v38 = vadd.f32 %v79_v33, %v65_v32 }
  0x28   :  { %v81_v40 = vadd.f32 %v80_v38, %v66_v34  ;;  %263 = vmatpush3.bf16.msra.mxu0 %v101_v35 }
  0x29   :  { %264 = vmatprep.subr.bf16.mxu0 %v392_v0 }
  0x2a   :  { %v82_v45 = vadd.f32 %v81_v40, %v67_v39 }
  0x2c   :  { %v83_v47 = vadd.f32 %v82_v45, %v68_v41  ;;  %265 = vmatpush3.bf16.msra.mxu0 %v102_v42 }
  0x2d   :  { %266 = vmatprep.subr.bf16.mxu0 %v392_v0 }
  0x2e   :  { %v84_v52 = vadd.f32 %v83_v47, %v69_v46 }
  0x30   :  { %v85_v54 = vadd.f32 %v84_v52, %v70_v48  ;;  %267 = vmatpush3.bf16.msra.mxu0 %v103_v49  ;;  %153 = vperm.xlu0 %284, %v51_v58  }
  0x31   :  { %268 = vmatprep.subr.bf16.mxu0 %v392_v0 }
  0x32   :  { %v86_v57 = vadd.f32 %v85_v54, %v71_v53 }
  0x34   :  { %v87_v60 = vadd.f32 %v86_v57, %v72_v55  ;;  %269 = vmatpush3.bf16.msra.mxu0 %v104_v56 }
  0x36   :  { %v88_v10 = vrot.slane %v87_v60, 4 }
  0x37   :  { %271 = vmatmul.mubr.bf16.vlgmr.msra.gmra.mrb[0].mxu0 %v96_v59 }
  0x38   :  { %v89_v11 = vadd.f32 %v88_v10, %v87_v60 }
  0x3a   :  { %v90_v12 = vrot.slane %v89_v11, 2 }
  0x3c   :  { %v91_v13 = vadd.f32 %v90_v12, %v89_v11 }
  0x3e   :  { %v92_v14 = vrot.slane %v91_v13, 1 }
  0x40   :  { %v93_v15 = vadd.f32 %v92_v14, %v91_v13 }
  0x42   :  { %v94_v17 = vadd.f32 1e-12, %v93_v15 }
  0xa7   :  { %v54_v62 = vpop.xlane.xlu0 %53 }
  0xa8   :  { %v55_v16 = vadd.f32 1e-12, %v54_v62 }
  0xaa   :  { %285 = vrsqrt.f32 %v55_v16 }
  0xab   :  { %287 = vrsqrt.f32 %v94_v17 }
  0xaf   :  { %v154_v1 = vpop.permute.xlu0 %153 }
  0xb0   :  { %vm155_vm1 = vcmp.eq.s32.totalorder %v154_v1, %v149_v63 }
  0xb1   :  { %v243_v2 = vsel %vm155_vm1, 1.0, %v392_v0  ;;  %vm171_vm5 = vmxor %vm155_vm1, %vm395_vm4 }
  0xb2   :  { %v182_v3 = vrot.slane %v243_v2, 4  ;;  %vm172_vm6 = vmand %vm156_vm3, %vm171_vm5 }
  0xb4   :  { %v183_v4 = vadd.f32 %v243_v2, %v182_v3  ;;  %v286_v18 = vpop.eup %285 }
  0xb5   :  { %v288_v19 = vpop.eup %287 }
  0xb6   :  { %v184_v5 = vrot.slane %v183_v4, 2 }
  0xb8   :  { %v185_v6 = vadd.f32 %v184_v5, %v183_v4 }
  0xba   :  { %v186_v7 = vrot.slane %v185_v6, 1 }
  0xbc   :  { %v187_v8 = vadd.f32 %v186_v7, %v185_v6 }
  0xbe   :  { %vm196_vm2 = vcmp.gt.f32.partialorder %v187_v8, 0.0 }
  0xbf   :  { %v244_v9 = vsel %vm196_vm2, 1.0, %v392_v0 }
  0xc0   :  { %199 = vst [vmem:[#allocation8] sm:$0x1] %v244_v9 }
 0x10a   :  { %v139_v20 = vpop.f32.mrb[0].mxu0 }
 0x10b   :  { %v145_v21 = vmul.f32 %v286_v18, %v139_v20  ;;  %v272_v22 = vpop.f32.mrb[1].mxu0 }
 0x10c   :  { %v142_v23 = vpop.f32.mrb[2].mxu0 }
 0x10d   :  { %v146_v24 = vmul.f32 %v288_v19, %v145_v21  ;;  %v273_v25 = vpop.f32.mrb[3].mxu0 }
 0x10f   :  { %v242_v0 = vadd.f32 -0.1, %v146_v24  ;;  %v159_v26 = vadd.f32 0.1, %v146_v24 }
 0x111   :  { %v158_v27 = vmul.f32 -10.0, %v242_v0  ;;  %v160_v28 = vmul.f32 10.0, %v159_v26 }
 0x113   :  { %v161_v29 = vsel %vm155_vm1, %v158_v27, %v160_v28 }
 0x114   :  { %v162_v30 = vmul.f32 1.442695, %v161_v29 }
 0x116   :  { %289 = vpow2.f32 %v162_v30 }
 0x120   :  { %v290_v31 = vpop.eup %289 }
 0x121   :  { %v164_v32 = vsel %vm155_vm1, %v290_v31, 0.0  ;;  %v173_v33 = vsel %vm172_vm6, %v290_v31, 0.0 }
 0x122   :  { %v165_v34 = vrot.slane %v164_v32, 4  ;;  %v174_v35 = vrot.slane %v173_v33, 4 }
 0x124   :  { %v166_v36 = vadd.f32 %v165_v34, %v164_v32  ;;  %v175_v37 = vadd.f32 %v174_v35, %v173_v33 }
 0x126   :  { %v167_v38 = vrot.slane %v166_v36, 2  ;;  %v176_v39 = vrot.slane %v175_v37, 2 }
 0x128   :  { %v168_v40 = vadd.f32 %v167_v38, %v166_v36  ;;  %v177_v41 = vadd.f32 %v176_v39, %v175_v37 }
 0x12a   :  { %v178_v42 = vrot.slane %v177_v41, 1  ;;  %v169_v43 = vrot.slane %v168_v40, 1 }
 0x12c   :  { %v179_v44 = vadd.f32 %v178_v42, %v177_v41  ;;  %v170_v45 = vadd.f32 %v169_v43, %v168_v40 }
 0x12e   :  { %v192_v46 = vadd.f32 1.0, %v179_v44  ;;  %v188_v47 = vadd.f32 1.0, %v170_v45 }
 0x130   :  { %291 = vlog2.f32 %v192_v46 }
 0x131   :  { %293 = vlog2.f32 %v188_v47 }
 0x13a   :  { %v292_v48 = vpop.eup %291 }
 0x13b   :  { %v294_v49 = vpop.eup %293  ;;  %v194_v50 = vmul.f32 0.6931472, %v292_v48 }
 0x13c   :  { %v190_v51 = vmul.f32 0.6931472, %v294_v49 }
 0x13d   :  { %195 = vst [vmem:[#allocation6] sm:$0x1] %v194_v50 }
 0x13e   :  { %328 = shalt.err (!%p325_p12)
}
 0x13f   :  { %s329_s18 = scalar_lea.hbm %s518_s4, 16 }
 0x140   :  { %p330_p13 = scmp.ne.s32.totalorder %s518_s4, %s329_s18  ;;  %p333_p0 = scmp.lt.u32.totalorder %s329_s18, %s518_s4 }
 0x142   :  { %p335_p1 = pnand %p333_p0, %p330_p13 }
 0x144   :  { %338 = shalt.err (!%p335_p1)
}
 0x145   :  { %219 = dma.vmem_to_hbm [thread:$0]  %s217_s9, 16, %s518_s4, [#allocation7]   ;;  %191 = vst [vmem:[#allocation5] sm:$0x1] %v190_v51 }
 0x146   :  { %s339_s25 = scalar_lea.vmem %s462_s11, 16  ;;  %s343_s26 = scalar_lea.vmem %s462_s11, 32 }
 0x147   :  { %p340_p2 = scmp.ne.s32.totalorder %s462_s11, %s339_s25  ;;  %p344_p3 = scmp.lt.s32.totalorder %s462_s11, %s462_s11 }
 0x148   :  { %p345_p4 = scmp.lt.s32.totalorder %s343_s26, %s339_s25 }
 0x14a   :  { %p346_p5 = por %p345_p4, %p344_p3 }
 0x14c   :  { %p347_p6 = pnand %p346_p5, %p340_p2 }
 0x14e   :  { %350 = shalt.err (!%p347_p6)
}
 0x14f   :  { %s351_s29 = scalar_lea.hbm %s517_s3, 16 }
 0x150   :  { %p352_p7 = scmp.ne.s32.totalorder %s517_s3, %s351_s29  ;;  %p355_p8 = scmp.lt.u32.totalorder %s351_s29, %s517_s3 }
 0x152   :  { %p357_p9 = pnand %p355_p8, %p352_p7 }
 0x154   :  { %360 = shalt.err (!%p357_p9)
}
 0x155   :  { %209 = dma.vmem_to_hbm [thread:$0]  %s462_s11, 16, %s517_s3, [#allocation4]  }
 0x156   :  { %s361_s8 = scalar_lea.vmem %s464_s13, 16  ;;  %s365_s2 = scalar_lea.vmem %s464_s13, 32 }
 0x157   :  { %p362_p10 = scmp.ne.s32.totalorder %s464_s13, %s361_s8  ;;  %p366_p11 = scmp.lt.s32.totalorder %s464_s13, %s464_s13 }
 0x158   :  { %p367_p12 = scmp.lt.s32.totalorder %s365_s2, %s361_s8 }
 0x15a   :  { %p368_p13 = por %p367_p12, %p366_p11 }
 0x15c   :  { %p369_p0 = pnand %p368_p13, %p362_p10 }
 0x15e   :  { %372 = shalt.err (!%p369_p0)
}
 0x15f   :  { %s373_s12 = scalar_lea.hbm %s519_s5, 16 }
 0x160   :  { %p374_p1 = scmp.ne.s32.totalorder %s519_s5, %s373_s12  ;;  %p377_p2 = scmp.lt.u32.totalorder %s373_s12, %s519_s5 }
 0x162   :  { %p379_p3 = pnand %p377_p2, %p374_p1 }
 0x164   :  { %382 = shalt.err (!%p379_p3)
}
 0x165   :  { %229 = dma.vmem_to_hbm [thread:$0]  %s464_s13, 16, %s519_s5, [#allocation7]  }
 0x166   :  { %385 = dma.done.wait [#allocation4], 16  }
 0x167   :  { %386 = vsyncadd [#allocation4], 4294967280 }
 0x168   :  { %387 = dma.done.wait [#allocation7], 32  }
 0x169   :  { %388 = vsyncadd [#allocation7], 4294967264 }
 0x16a   :  { %239 = vsyncpa [#allocation3], 1 }
 0x16b   :  { %240 = vsyncpa [#allocation4], 1 }
 0x16c   :  { %241 = vsyncpa [#allocation7], 1 }

</bundles_post_ra>
